<compile_context>
chip_gen: v6e
topology: v6e:2x2x1
jax: 0.10.0
libtpu: 0.0.40
codegen_flags: <defaults>
</compile_context>

<pallas_src>
import jax
import jax.numpy as jnp
import numpy as np
from jax.experimental import pallas as pl
from jax.experimental.pallas import tpu as pltpu

DIM_IN = 32      # dim_in for this synthetic instance
H1 = 254
H1P = 256        # hidden-1 padded to a full 256-lane tile
H2 = 128
OUT = 2
OUTP = 128       # output padded to a full 128-lane store


def dnn_kernel(x_ref, w1_ref, b1_ref, w2_ref, b2_ref, w3_ref, b3_ref, out_ref):
    # BatchNorms are pre-folded into the weights; Dropout is identity (eval mode).
    h = jnp.dot(x_ref[...], w1_ref[...],
                preferred_element_type=jnp.float32) + b1_ref[...]
    h = jnp.maximum(h, 0.0)

    h = jnp.dot(h, w2_ref[...],
                preferred_element_type=jnp.float32) + b2_ref[...]
    h = jnp.maximum(h, 0.0)

    out_ref[...] = jnp.dot(h, w3_ref[...],
                           preferred_element_type=jnp.float32) + b3_ref[...]


def _round_up(n, m):
    return ((n + m - 1) // m) * m


def fold_bn(gamma, beta, mean, var, eps=1e-5):
    """Return (scale, shift) such that bn(x) = x * scale + shift (inference)."""
    scale = gamma / jnp.sqrt(var + eps)
    shift = beta - mean * scale
    return scale.reshape(1, -1), shift.reshape(1, -1)


def _fold_and_pad(params, weight_dtype):
    """Fold BN scale/shift into the adjacent Linear weights; zero-pad H1->256, OUT->128."""
    (s0, t0, w1, b1, s1, t1, w2, b2, s2, t2, w3, b3) = params

    # (x*s + t) @ W + b  ==  x @ (s[:,None]*W) + (t @ W + b)
    w1f = s0.reshape(-1, 1) * w1
    b1f = t0 @ w1 + b1
    w2f = s1.reshape(-1, 1) * w2
    b2f = t1 @ w2 + b2
    w3f = s2.reshape(-1, 1) * w3
    b3f = t2 @ w3 + b3

    # Zero padding is numerically inert: padded hidden columns are relu(0+0)=0 and
    # the matching w2 rows / output lanes are zero.
    w1p = jnp.zeros((DIM_IN, H1P), jnp.float32).at[:, :H1].set(w1f)
    b1p = jnp.zeros((1, H1P), jnp.float32).at[:, :H1].set(b1f)
    w2p = jnp.zeros((H1P, H2), jnp.float32).at[:H1, :].set(w2f)
    w3p = jnp.zeros((H2, OUTP), jnp.float32).at[:, :OUT].set(w3f)
    b3p = jnp.zeros((1, OUTP), jnp.float32).at[:, :OUT].set(b3f)

    cast = lambda w: w.astype(weight_dtype)
    return cast(w1p), b1p, cast(w2p), b2f, cast(w3p), b3p


def dnn_forward(x, params, *, tb=512, weight_dtype=jnp.float32):
    """x: (B, DIM_IN) float32. Returns logits (B, 2)."""
    B, D = x.shape
    assert D == DIM_IN

    w1, b1, w2, b2, w3, b3 = _fold_and_pad(params, weight_dtype)

    # Batch tile: as large as requested (multiple of 8, default 512 = 4x128) but
    # never larger than the (8-rounded) batch; pad batch to a tile multiple.
    tb_eff = min(tb, _round_up(B, 8))
    B_pad = _round_up(B, tb_eff)
    if B_pad != B:
        x = jnp.pad(x, ((0, B_pad - B), (0, 0)))

    full = lambda shape: pl.BlockSpec(shape, lambda i: (0, 0))

    out = pl.pallas_call(
        dnn_kernel,
        out_shape=jax.ShapeDtypeStruct((B_pad, OUTP), jnp.float32),
        grid_spec=pltpu.PrefetchScalarGridSpec(
            num_scalar_prefetch=0,
            grid=(B_pad // tb_eff,),
            in_specs=[
                pl.BlockSpec((tb_eff, DIM_IN), lambda i: (i, 0)),  # x tile over batch
                full((DIM_IN, H1P)), full((1, H1P)),               # w1, b1 (folded, padded)
                full((H1P, H2)),     full((1, H2)),                # w2, b2 (folded, padded)
                full((H2, OUTP)),    full((1, OUTP)),              # w3, b3 (folded, padded)
            ],
            out_specs=pl.BlockSpec((tb_eff, OUTP), lambda i: (i, 0)),
        ),
        compiler_params=pltpu.CompilerParams(
            dimension_semantics=("parallel",),
            vmem_limit_bytes=64 << 20),
    )(x, w1, b1, w2, b2, w3, b3)

    return out[:B, :OUT]


def init_params(key):
    ks = jax.random.split(key, 16)

    def bn(kg, kb, km, kv, n):
        gamma = 1.0 + 0.1 * jax.random.normal(kg, (n,), jnp.float32)
        beta = 0.1 * jax.random.normal(kb, (n,), jnp.float32)
        mean = 0.1 * jax.random.normal(km, (n,), jnp.float32)
        var = jnp.abs(1.0 + 0.1 * jax.random.normal(kv, (n,), jnp.float32))
        return fold_bn(gamma, beta, mean, var)

    def linear(kw, kb, n_in, n_out):
        bound = 1.0 / np.sqrt(n_in)
        w = jax.random.uniform(kw, (n_in, n_out), jnp.float32, -bound, bound)
        b = jax.random.uniform(kb, (1, n_out), jnp.float32, -bound, bound)
        return w, b

    s0, t0 = bn(ks[0], ks[1], ks[2], ks[3], DIM_IN)
    w1, b1 = linear(ks[4], ks[5], DIM_IN, H1)
    s1, t1 = bn(ks[6], ks[7], ks[8], ks[9], H1)
    w2, b2 = linear(ks[10], ks[11], H1, H2)
    s2, t2 = bn(ks[12], ks[13], ks[14], ks[15], H2)
    kw3, kb3 = jax.random.split(jax.random.fold_in(key, 99))
    w3, b3 = linear(kw3, kb3, H2, OUT)
    return (s0, t0, w1, b1, s1, t1, w2, b2, s2, t2, w3, b3)


def dnn_reference(x, params):
    """Pure-JAX reference with un-folded BN (original module semantics, eval mode)."""
    (s0, t0, w1, b1, s1, t1, w2, b2, s2, t2, w3, b3) = params
    h = x * s0 + t0
    h = jnp.maximum(h @ w1 + b1, 0.0)
    h = h * s1 + t1
    h = jnp.maximum(h @ w2 + b2, 0.0)
    h = h * s2 + t2
    return h @ w3 + b3


if __name__ == "__main__":
    key = jax.random.PRNGKey(0)
    kx, kp = jax.random.split(key)

    B = 16
    x = jax.random.normal(kx, (B, DIM_IN), jnp.float32)
    params = init_params(kp)

    logits = dnn_forward(x, params)          # tb defaults to 512; clamps to batch
    logits = jax.block_until_ready(logits)

    ref = dnn_reference(x, params)
    assert logits.shape == (B, OUT)
    np.testing.assert_allclose(np.asarray(logits), np.asarray(ref),
                               rtol=1e-4, atol=1e-4)
    print("KERNEL_OK")
</pallas_src>

<mosaic_0001>
module attributes {stable_mosaic.version = 11 : i64} {
  func.func @dnn_kernel(%arg0: i32, %arg1: memref<16x32xf32, #tpu.memory_space<vmem>>, %arg2: memref<32x256xf32, #tpu.memory_space<vmem>>, %arg3: memref<1x256xf32, #tpu.memory_space<vmem>>, %arg4: memref<256x128xf32, #tpu.memory_space<vmem>>, %arg5: memref<1x128xf32, #tpu.memory_space<vmem>>, %arg6: memref<128x128xf32, #tpu.memory_space<vmem>>, %arg7: memref<1x128xf32, #tpu.memory_space<vmem>>, %arg8: memref<16x128xf32, #tpu.memory_space<vmem>>) attributes {dimension_semantics = [#tpu.dimension_semantics<parallel>], iteration_bounds = array<i64: 1>, scalar_prefetch = 0 : i64, scratch_operands = 0 : i64, tpu.core_type = #tpu.core_type<tc>, window_params = [{transform_indices = @transform_0, window_bounds = array<i64: 16, 32>}, {pipeline_mode = #tpu.pipeline_mode<synchronous>, transform_indices = @transform_1, window_bounds = array<i64: 32, 256>}, {pipeline_mode = #tpu.pipeline_mode<synchronous>, transform_indices = @transform_2, window_bounds = array<i64: 1, 256>}, {pipeline_mode = #tpu.pipeline_mode<synchronous>, transform_indices = @transform_3, window_bounds = array<i64: 256, 128>}, {pipeline_mode = #tpu.pipeline_mode<synchronous>, transform_indices = @transform_4, window_bounds = array<i64: 1, 128>}, {pipeline_mode = #tpu.pipeline_mode<synchronous>, transform_indices = @transform_5, window_bounds = array<i64: 128, 128>}, {pipeline_mode = #tpu.pipeline_mode<synchronous>, transform_indices = @transform_6, window_bounds = array<i64: 1, 128>}, {transform_indices = @transform_7, window_bounds = array<i64: 16, 128>}]} {
    %c0 = arith.constant 0 : index
    %c0_0 = arith.constant 0 : index
    %0 = vector.load %arg1[%c0, %c0_0] : memref<16x32xf32, #tpu.memory_space<vmem>>, vector<16x32xf32>
    %c0_1 = arith.constant 0 : index
    %c0_2 = arith.constant 0 : index
    %1 = vector.load %arg2[%c0_1, %c0_2] : memref<32x256xf32, #tpu.memory_space<vmem>>, vector<32x256xf32>
    %cst = arith.constant dense<0.000000e+00> : vector<16x256xf32>
    %2 = tpu.matmul %0, %1, %cst {dimension_numbers = #tpu.dot_dimension_numbers<[1], [0], [0], [1], [0, 0, 1, 1], [], []>} : vector<16x32xf32>, vector<32x256xf32>, vector<16x256xf32> -> vector<16x256xf32>
    %c0_3 = arith.constant 0 : index
    %c0_4 = arith.constant 0 : index
    %3 = vector.load %arg3[%c0_3, %c0_4] : memref<1x256xf32, #tpu.memory_space<vmem>>, vector<1x256xf32>
    %4 = vector.broadcast %3 : vector<1x256xf32> to vector<16x256xf32>
    %5 = arith.addf %2, %4 : vector<16x256xf32>
    %cst_5 = arith.constant 0.000000e+00 : f32
    %6 = vector.broadcast %cst_5 : f32 to vector<16x256xf32>
    %7 = arith.maximumf %5, %6 : vector<16x256xf32>
    %c0_6 = arith.constant 0 : index
    %c0_7 = arith.constant 0 : index
    %8 = vector.load %arg4[%c0_6, %c0_7] : memref<256x128xf32, #tpu.memory_space<vmem>>, vector<256x128xf32>
    %cst_8 = arith.constant dense<0.000000e+00> : vector<16x128xf32>
    %9 = tpu.matmul %7, %8, %cst_8 {dimension_numbers = #tpu.dot_dimension_numbers<[1], [0], [0], [1], [0, 0, 1, 1], [], []>} : vector<16x256xf32>, vector<256x128xf32>, vector<16x128xf32> -> vector<16x128xf32>
    %c0_9 = arith.constant 0 : index
    %c0_10 = arith.constant 0 : index
    %10 = vector.load %arg5[%c0_9, %c0_10] : memref<1x128xf32, #tpu.memory_space<vmem>>, vector<1x128xf32>
    %11 = vector.broadcast %10 : vector<1x128xf32> to vector<16x128xf32>
    %12 = arith.addf %9, %11 : vector<16x128xf32>
    %cst_11 = arith.constant 0.000000e+00 : f32
    %13 = vector.broadcast %cst_11 : f32 to vector<16x128xf32>
    %14 = arith.maximumf %12, %13 : vector<16x128xf32>
    %c0_12 = arith.constant 0 : index
    %c0_13 = arith.constant 0 : index
    %15 = vector.load %arg6[%c0_12, %c0_13] : memref<128x128xf32, #tpu.memory_space<vmem>>, vector<128x128xf32>
    %cst_14 = arith.constant dense<0.000000e+00> : vector<16x128xf32>
    %16 = tpu.matmul %14, %15, %cst_14 {dimension_numbers = #tpu.dot_dimension_numbers<[1], [0], [0], [1], [0, 0, 1, 1], [], []>} : vector<16x128xf32>, vector<128x128xf32>, vector<16x128xf32> -> vector<16x128xf32>
    %c0_15 = arith.constant 0 : index
    %c0_16 = arith.constant 0 : index
    %17 = vector.load %arg7[%c0_15, %c0_16] : memref<1x128xf32, #tpu.memory_space<vmem>>, vector<1x128xf32>
    %18 = vector.broadcast %17 : vector<1x128xf32> to vector<16x128xf32>
    %19 = arith.addf %16, %18 : vector<16x128xf32>
    %c0_17 = arith.constant 0 : index
    %c0_18 = arith.constant 0 : index
    %20 = vector.load %arg8[%c0_17, %c0_18] : memref<16x128xf32, #tpu.memory_space<vmem>>, vector<16x128xf32>
    tpu.vector_store %arg8[%c0_17, %c0_18], %19 {strides = array<i32>} : memref<16x128xf32, #tpu.memory_space<vmem>>, vector<16x128xf32>,
    return
  }
  func.func @transform_0(%arg0: i32) -> (i32, i32) {
    %c0_i32 = arith.constant 0 : i32
    %c0_i32_0 = arith.constant 0 : i32
    return %arg0, %c0_i32 : i32, i32
  }
  func.func @transform_1(%arg0: i32) -> (i32, i32) {
    %c0_i32 = arith.constant 0 : i32
    %c0_i32_0 = arith.constant 0 : i32
    %c0_i32_1 = arith.constant 0 : i32
    return %c0_i32, %c0_i32_0 : i32, i32
  }
  func.func @transform_2(%arg0: i32) -> (i32, i32) {
    %c0_i32 = arith.constant 0 : i32
    %c0_i32_0 = arith.constant 0 : i32
    %c0_i32_1 = arith.constant 0 : i32
    return %c0_i32, %c0_i32_0 : i32, i32
  }
  func.func @transform_3(%arg0: i32) -> (i32, i32) {
    %c0_i32 = arith.constant 0 : i32
    %c0_i32_0 = arith.constant 0 : i32
    %c0_i32_1 = arith.constant 0 : i32
    return %c0_i32, %c0_i32_0 : i32, i32
  }
  func.func @transform_4(%arg0: i32) -> (i32, i32) {
    %c0_i32 = arith.constant 0 : i32
    %c0_i32_0 = arith.constant 0 : i32
    %c0_i32_1 = arith.constant 0 : i32
    return %c0_i32, %c0_i32_0 : i32, i32
  }
  func.func @transform_5(%arg0: i32) -> (i32, i32) {
    %c0_i32 = arith.constant 0 : i32
    %c0_i32_0 = arith.constant 0 : i32
    %c0_i32_1 = arith.constant 0 : i32
    return %c0_i32, %c0_i32_0 : i32, i32
  }
  func.func @transform_6(%arg0: i32) -> (i32, i32) {
    %c0_i32 = arith.constant 0 : i32
    %c0_i32_0 = arith.constant 0 : i32
    %c0_i32_1 = arith.constant 0 : i32
    return %c0_i32, %c0_i32_0 : i32, i32
  }
  func.func @transform_7(%arg0: i32) -> (i32, i32) {
    %c0_i32 = arith.constant 0 : i32
    %c0_i32_0 = arith.constant 0 : i32
    return %arg0, %c0_i32 : i32, i32
  }
}

</mosaic_0001>

<bundles_post_ra>
// kernel: tpu_custom_call.1
= control target key start
LH: loop header
LB: loop body
LE: loop exit
PB: predicated region body
PF: predicated region fallthrough
CT: control target
= control target key end

     0   :  { %12 = vsyncpa [#allocation3], 0  ;;  %s728_s0 = inlined_call_operand.hbm [shape: f32[16,32], index: 0, kind: input, shape index: {}]   ;;  %s729_s1 = inlined_call_operand.hbm [shape: f32[32,256], index: 1, kind: input, shape index: {}]   ;;  %s730_s2 = inlined_call_operand.vmem [shape: f32[1,256], index: 2, kind: input, shape index: {}]   ;;  %s731_s3 = inlined_call_operand.hbm [shape: f32[256,128], index: 3, kind: input, shape index: {}]   ;;  %s732_s4 = inlined_call_operand.vmem [shape: f32[1,128], index: 4, kind: input, shape index: {}]   ;;  %s733_s5 = inlined_call_operand.hbm [shape: f32[128,128], index: 5, kind: input, shape index: {}]   ;;  %s734_s6 = inlined_call_operand.vmem [shape: f32[1,128], index: 6, kind: input, shape index: {}]   ;;  %s735_s7 = inlined_call_operand.hbm [shape: f32[16,128], index: 7, kind: output, shape index: {}]  }
   0x1   :  { %13 = vsyncpa [#allocation6], 0 }
   0x2   :  { %14 = vsyncpa [#allocation9], 0 }
   0x3   :  { %15 = vsyncpa [#allocation4], 0  ;;  %s640_s24 = smov [#allocation5]  }
   0x4   :  { %s33_s25 = sshll.u32 %s640_s24, 4  ;;  %s34_s25 = int_to_ptr.vmem [resolvable:$true] %s33_s25 }
   0x5   :  { %s540_s26 = scalar_lea.vmem %s34_s25, 1024  ;;  %p545_p1 = scmp.lt.s32.totalorder %s34_s25, %s34_s25 }
   0x6   :  { %p541_p0 = scmp.ne.s32.totalorder %s34_s25, %s540_s26  ;;  %p546_p2 = scmp.lt.s32.totalorder %s540_s26, %s540_s26 }
   0x8   :  { %p547_p3 = por %p546_p2, %p545_p1 }
   0xa   :  { %p548_p4 = pnand %p547_p3, %p541_p0 }
   0xc   :  { %551 = shalt.err (!%p548_p4)
}
   0xd   :  { %s641_s27 = smov 256   ;;  %s642_s28 = smov 16  }
   0xe   :  { %39 = dma.hbm_to_vmem [thread:$0]  %s729_s1, 1024, %s34_s25, [#allocation6], %s641_s27, %s641_s27, %s642_s28  }
   0xf   :  { %s643_s8 = smov [#allocation2]  }
  0x10   :  { %s21_s9 = sshll.u32 %s643_s8, 4  ;;  %s22_s9 = int_to_ptr.vmem [resolvable:$true] %s21_s9 }
  0x11   :  { %s560_s10 = scalar_lea.vmem %s22_s9, 256  ;;  %p565_p6 = scmp.lt.s32.totalorder %s22_s9, %s22_s9 }
  0x12   :  { %p561_p5 = scmp.ne.s32.totalorder %s22_s9, %s560_s10  ;;  %p566_p7 = scmp.lt.s32.totalorder %s560_s10, %s560_s10 }
  0x14   :  { %p567_p8 = por %p566_p7, %p565_p6 }
  0x16   :  { %p568_p9 = pnand %p567_p8, %p561_p5 }
  0x18   :  { %571 = shalt.err (!%p568_p9)
}
  0x19   :  { %s644_s11 = smov 128   ;;  %s645_s12 = smov 8  }
  0x1a   :  { %27 = dma.hbm_to_vmem [thread:$0]  %s728_s0, 256, %s22_s9, [#allocation3], %s644_s11, %s644_s11, %s645_s12  }
  0x1b   :  { %s646_s1 = smov [#allocation7]   ;;  %s647_s16 = smov [#allocation8]  }
  0x1c   :  { %s47_s15 = sshll.u32 %s646_s1, 4  ;;  %s61_s17 = sshll.u32 %s647_s16, 4  ;;  %s48_s15 = int_to_ptr.vmem [resolvable:$true] %s47_s15  ;;  %s62_s17 = int_to_ptr.vmem [resolvable:$true] %s61_s17 }
  0x1d   :  { %s580_s18 = scalar_lea.vmem %s48_s15, 4096  ;;  %p585_p11 = scmp.lt.s32.totalorder %s48_s15, %s48_s15 }
  0x1e   :  { %p581_p10 = scmp.ne.s32.totalorder %s48_s15, %s580_s18  ;;  %p586_p12 = scmp.lt.s32.totalorder %s580_s18, %s580_s18 }
  0x20   :  { %p587_p13 = por %p586_p12, %p585_p11 }
  0x22   :  { %p588_p0 = pnand %p587_p13, %p581_p10 }
  0x24   :  { %591 = shalt.err (!%p588_p0)
}
  0x25   :  { %53 = dma.hbm_to_vmem [thread:$0]  %s731_s3, 4096, %s48_s15, [#allocation6], %s644_s11, %s644_s11, %s645_s12  }
  0x26   :  { %s600_s0 = scalar_lea.vmem %s62_s17, 2048  ;;  %p605_p2 = scmp.lt.s32.totalorder %s62_s17, %s62_s17 }
  0x27   :  { %p601_p1 = scmp.ne.s32.totalorder %s62_s17, %s600_s0  ;;  %p606_p3 = scmp.lt.s32.totalorder %s600_s0, %s600_s0 }
  0x29   :  { %p607_p4 = por %p606_p3, %p605_p2 }
  0x2b   :  { %p608_p5 = pnand %p607_p4, %p601_p1 }
  0x2d   :  { %611 = shalt.err (!%p608_p5)
}
  0x2e   :  { %67 = dma.hbm_to_vmem [thread:$0]  %s733_s5, 2048, %s62_s17, [#allocation9], %s644_s11, %s644_s11, %s645_s12  }
  0x2f   :  { %632 = dma.done.wait [#allocation3], 256  }
  0x30   :  { %633 = vsyncadd [#allocation3], 4294967040 }
  0x31   :  { %634 = dma.done.wait [#allocation6], 5120  }
  0x32   :  { %635 = vsyncadd [#allocation6], 4294962176 }
  0x33   :  { %636 = dma.done.wait [#allocation9], 2048  }
  0x34   :  { %637 = vsyncadd [#allocation9], 4294965248  ;;  %v648_v0 = vmov 0.0   ;;  %v91_v1 = vld [vmem:[#allocation5 + $0x38] sm:$0xff]  ;;  %v90_v2 = vld [vmem:[#allocation5 + $0x30] sm:$0xff]  ;;  %vm104_vm0 = vcmask 261120   ;;  %v94_v53 = vlaneseq }
  0x35   :  { %175 = vmatprep.mubr.f32.mxu0 %v648_v0  ;;  %v89_v3 = vld [vmem:[#allocation5 + $0x28] sm:$0xff]  ;;  %135 = vmatprep.subr.mxu0 %v91_v1  ;;  %v88_v4 = vld [vmem:[#allocation5 + $0x20] sm:$0xff]  ;;  %v87_v5 = vld [vmem:[#allocation5 + $0x18] sm:$0xff]  ;;  %s649_s26 = smov [#allocation10]  }
  0x36   :  { %136 = vmatpush1.msra.mxu0 %v90_v2  ;;  %v86_v6 = vld [vmem:[#allocation5 + $0x10] sm:$0xff]  ;;  %v223_v7 = vld [vmem:[#allocation7 + $0xf8] sm:$0xff]  ;;  %v85_v9 = vld [vmem:[#allocation5 + $0x8] sm:$0xff]  ;;  %v95_v54 = vshrl.u32 %v94_v53, 7  ;;  %s413_s27 = sshll.u32 %s649_s26, 4  ;;  %s414_s27 = int_to_ptr.vmem [resolvable:$true] %s413_s27 }
  0x37   :  { %137 = vmatprep.subr.mxu0 %v89_v3  ;;  %v207_v8 = vld [vmem:[#allocation7 + $0x78] sm:$0xff]  ;;  %431 = vmatprep.subr.mxu1 %v223_v7  ;;  %v222_v10 = vld [vmem:[#allocation7 + $0xf0] sm:$0xff]  ;;  %v84_v12 = vld [vmem:[#allocation5] sm:$0xff]  ;;  %p617_p7 = scmp.lt.s32.totalorder %s414_s27, %s414_s27 }
  0x38   :  { %138 = vmatpush1.msra.mxu0 %v88_v4  ;;  %v206_v11 = vld [vmem:[#allocation7 + $0x70] sm:$0xff]  ;;  %432 = vmatpush3.msra.mxu1 %v207_v8  ;;  %v221_v13 = vld [vmem:[#allocation7 + $0xe8] sm:$0xff]  ;;  %v220_v16 = vld [vmem:[#allocation7 + $0xe0] sm:$0xff]  ;;  %v96_v55 = vsub.s32 0, %v95_v54  ;;  %v100_v57 = vsub.s32 1, %v95_v54 }
  0x39   :  { %139 = vmatprep.subr.mxu0 %v87_v5  ;;  %v82_v14 = vld [vmem:[#allocation2] sm:$0xff]  ;;  %433 = vmatprep.subr.mxu1 %v222_v10  ;;  %v205_v15 = vld [vmem:[#allocation7 + $0x68] sm:$0xff]  ;;  %v204_v17 = vld [vmem:[#allocation7 + $0x60] sm:$0xff] }
  0x3a   :  { %140 = vmatpush1.msra.mxu0 %v86_v6  ;;  %434 = vmatpush3.msra.mxu1 %v206_v11  ;;  %v219_v18 = vld [vmem:[#allocation7 + $0xd8] sm:$0xff]  ;;  %v218_v21 = vld [vmem:[#allocation7 + $0xd0] sm:$0xff]  ;;  %v217_v23 = vld [vmem:[#allocation7 + $0xc8] sm:$0xff] }
  0x3b   :  { %141 = vmatprep.subr.mxu0 %v85_v9  ;;  %435 = vmatprep.subr.mxu1 %v221_v13  ;;  %v83_v19 = vld [vmem:[#allocation2 + $0x8] sm:$0xff]  ;;  %v202_v22 = vld [vmem:[#allocation7 + $0x50] sm:$0xff]  ;;  %v201_v24 = vld [vmem:[#allocation7 + $0x48] sm:$0xff] }
  0x3c   :  { %142 = vmatpush1.msra.mxu0 %v84_v12  ;;  %436 = vmatpush3.msra.mxu1 %v205_v15  ;;  %v203_v20 = vld [vmem:[#allocation7 + $0x58] sm:$0xff]  ;;  %v216_v25 = vld [vmem:[#allocation7 + $0xc0] sm:$0xff]  ;;  %v214_v29 = vld [vmem:[#allocation7 + $0xb0] sm:$0xff] }
  0x3d   :  { %427 = vmatmul.mubr.msk.f32.vlgmr.msra.gmra.mxu0 %vm104_vm0, %v82_v14  ;;  %437 = vmatprep.subr.mxu1 %v220_v16  ;;  %v200_v26 = vld [vmem:[#allocation7 + $0x40] sm:$0xff]  ;;  %v215_v27 = vld [vmem:[#allocation7 + $0xb8] sm:$0xff]  ;;  %v198_v30 = vld [vmem:[#allocation7 + $0x30] sm:$0xff] }
  0x3e   :  { %181 = vmatprep.mubr.f32.mxu0 %v648_v0  ;;  %438 = vmatpush3.msra.mxu1 %v204_v17  ;;  %v199_v28 = vld [vmem:[#allocation7 + $0x38] sm:$0xff]  ;;  %v213_v31 = vld [vmem:[#allocation7 + $0xa8] sm:$0xff]  ;;  %v212_v33 = vld [vmem:[#allocation7 + $0xa0] sm:$0xff] }
  0x3f   :  { %439 = vmatprep.subr.mxu1 %v219_v18  ;;  %v197_v32 = vld [vmem:[#allocation7 + $0x28] sm:$0xff]  ;;  %v196_v34 = vld [vmem:[#allocation7 + $0x20] sm:$0xff]  ;;  %v211_v35 = vld [vmem:[#allocation7 + $0x98] sm:$0xff] }
  0x40   :  { %440 = vmatpush3.msra.mxu1 %v203_v20  ;;  %v195_v36 = vld [vmem:[#allocation7 + $0x18] sm:$0xff]  ;;  %v210_v37 = vld [vmem:[#allocation7 + $0x90] sm:$0xff]  ;;  %v209_v39 = vld [vmem:[#allocation7 + $0x88] sm:$0xff] }
  0x41   :  { %428 = vmatmul.mubr.msk.f32.gmra.mxu0 %vm104_vm0, %v83_v19  ;;  %441 = vmatprep.subr.mxu1 %v218_v21  ;;  %v194_v38 = vld [vmem:[#allocation7 + $0x10] sm:$0xff]  ;;  %v193_v40 = vld [vmem:[#allocation7 + $0x8] sm:$0xff]  ;;  %v208_v41 = vld [vmem:[#allocation7 + $0x80] sm:$0xff] }
  0x42   :  { %442 = vmatpush3.msra.mxu1 %v202_v22  ;;  %v192_v42 = vld [vmem:[#allocation7] sm:$0xff]  ;;  %v323_v43 = vld [vmem:[#allocation8 + $0x78] sm:$0xff]  ;;  %v322_v44 = vld [vmem:[#allocation8 + $0x70] sm:$0xff] }
  0x43   :  { %443 = vmatprep.subr.mxu1 %v217_v23  ;;  %487 = vmatprep.subr.mxu0 %v323_v43  ;;  %v321_v45 = vld [vmem:[#allocation8 + $0x68] sm:$0xff]  ;;  %v320_v46 = vld [vmem:[#allocation8 + $0x60] sm:$0xff]  ;;  %v319_v47 = vld [vmem:[#allocation8 + $0x58] sm:$0xff] }
  0x44   :  { %444 = vmatpush3.msra.mxu1 %v201_v24  ;;  %488 = vmatpush3.msra.mxu0 %v323_v43  ;;  %v318_v48 = vld [vmem:[#allocation8 + $0x50] sm:$0xff]  ;;  %v317_v49 = vld [vmem:[#allocation8 + $0x48] sm:$0xff]  ;;  %v316_v50 = vld [vmem:[#allocation8 + $0x40] sm:$0xff] }
  0x45   :  { %445 = vmatprep.subr.mxu1 %v216_v25  ;;  %489 = vmatprep.subr.mxu0 %v322_v44  ;;  %v315_v51 = vld [vmem:[#allocation8 + $0x38] sm:$0xff]  ;;  %v314_v52 = vld [vmem:[#allocation8 + $0x30] sm:$0xff]  ;;  %v313_v8 = vld [vmem:[#allocation8 + $0x28] sm:$0xff] }
  0x46   :  { %446 = vmatpush3.msra.mxu1 %v200_v26  ;;  %490 = vmatpush3.msra.mxu0 %v322_v44  ;;  %v92_v56 = vld [vmem:[%s730_s2] sm:$0x3]  ;;  %v312_v9 = vld [vmem:[#allocation8 + $0x20] sm:$0xff]  ;;  %v311_v10 = vld [vmem:[#allocation8 + $0x18] sm:$0xff] }
  0x47   :  { %447 = vmatprep.subr.mxu1 %v215_v27  ;;  %491 = vmatprep.subr.mxu0 %v321_v45  ;;  %v97_v58 = vrot.slane %v92_v56, %v96_v55  ;;  %v101_v59 = vrot.slane %v92_v56, %v100_v57  ;;  %v310_v11 = vld [vmem:[#allocation8 + $0x10] sm:$0xff]  ;;  %v309_v12 = vld [vmem:[#allocation8 + $0x8] sm:$0xff]  ;;  %v308_v13 = vld [vmem:[#allocation8] sm:$0xff] }
  0x48   :  { %448 = vmatpush3.msra.mxu1 %v199_v28  ;;  %492 = vmatpush3.msra.mxu0 %v321_v45  ;;  %v429_v15 = vld [vmem:[%s732_s4] ss:$0 sm:$0xff]  ;;  %s612_s4 = scalar_lea.vmem %s414_s27, 256 }
  0x49   :  { %449 = vmatprep.subr.mxu1 %v214_v29  ;;  %493 = vmatprep.subr.mxu0 %v320_v46  ;;  %v430_v25 = vld [vmem:[%s734_s6] ss:$0 sm:$0xff]  ;;  %p613_p6 = scmp.ne.s32.totalorder %s414_s27, %s612_s4  ;;  %p618_p8 = scmp.lt.s32.totalorder %s612_s4, %s612_s4 }
  0x4a   :  { %450 = vmatpush3.msra.mxu1 %v198_v30  ;;  %494 = vmatpush3.msra.mxu0 %v320_v46 }
  0x4b   :  { %451 = vmatprep.subr.mxu1 %v213_v31  ;;  %495 = vmatprep.subr.mxu0 %v319_v47  ;;  %p619_p9 = por %p618_p8, %p617_p7 }
  0x4c   :  { %452 = vmatpush3.msra.mxu1 %v197_v32  ;;  %496 = vmatpush3.msra.mxu0 %v319_v47 }
  0x4d   :  { %453 = vmatprep.subr.mxu1 %v212_v33  ;;  %497 = vmatprep.subr.mxu0 %v318_v48  ;;  %p620_p10 = pnand %p619_p9, %p613_p6 }
  0x4e   :  { %454 = vmatpush3.msra.mxu1 %v196_v34  ;;  %498 = vmatpush3.msra.mxu0 %v318_v48 }
  0x4f   :  { %455 = vmatprep.subr.mxu1 %v211_v35  ;;  %499 = vmatprep.subr.mxu0 %v317_v49 }
  0x50   :  { %456 = vmatpush3.msra.mxu1 %v195_v36  ;;  %500 = vmatpush3.msra.mxu0 %v317_v49 }
  0x51   :  { %457 = vmatprep.subr.mxu1 %v210_v37  ;;  %501 = vmatprep.subr.mxu0 %v316_v50 }
  0x52   :  { %458 = vmatpush3.msra.mxu1 %v194_v38  ;;  %502 = vmatpush3.msra.mxu0 %v316_v50 }
  0x53   :  { %459 = vmatprep.subr.mxu1 %v209_v39  ;;  %503 = vmatprep.subr.mxu0 %v315_v51 }
  0x54   :  { %460 = vmatpush3.msra.mxu1 %v193_v40  ;;  %504 = vmatpush3.msra.mxu0 %v315_v51 }
  0x55   :  { %461 = vmatprep.subr.mxu1 %v208_v41  ;;  %505 = vmatprep.subr.mxu0 %v314_v52 }
  0x56   :  { %462 = vmatpush3.msra.mxu1 %v192_v42  ;;  %506 = vmatpush3.msra.mxu0 %v314_v52 }
  0x57   :  { %507 = vmatprep.subr.mxu0 %v313_v8 }
  0x58   :  { %508 = vmatpush3.msra.mxu0 %v313_v8 }
  0x59   :  { %509 = vmatprep.subr.mxu0 %v312_v9 }
  0x5a   :  { %510 = vmatpush3.msra.mxu0 %v312_v9 }
  0x5b   :  { %511 = vmatprep.subr.mxu0 %v311_v10 }
  0x5c   :  { %512 = vmatpush3.msra.mxu0 %v311_v10 }
  0x5d   :  { %513 = vmatprep.subr.mxu0 %v310_v11 }
  0x5e   :  { %514 = vmatpush3.msra.mxu0 %v310_v11 }
  0x5f   :  { %515 = vmatprep.subr.mxu0 %v309_v12 }
  0x60   :  { %516 = vmatpush3.msra.mxu0 %v309_v12 }
  0x61   :  { %517 = vmatprep.subr.mxu0 %v308_v13 }
  0x62   :  { %518 = vmatpush3.msra.mxu0 %v308_v13 }
  0xfd   :  { %v177_v60 = vpop.f32.mrf.mxu0 }
  0xfe   :  { %v178_v61 = vadd.f32 %v177_v60, %v97_v58 }
  0xff   :  { %v179_v62 = vpop.f32.mrf.mxu0 }
 0x100   :  { %v180_v63 = vadd.f32 %v179_v62, %v101_v59  ;;  %v188_v2 = vmax.f32 %v178_v61, 0.0 }
 0x101   :  { %v183_v0 = vpop.f32.mrf.mxu0 }
 0x102   :  { %v189_v1 = vmax.f32 %v180_v63, 0.0  ;;  %v184_v3 = vadd.f32 %v183_v0, %v97_v58 }
 0x103   :  { %v185_v4 = vpop.f32.mrf.mxu0 }
 0x104   :  { %v186_v5 = vadd.f32 %v185_v4, %v101_v59  ;;  %295 = vmatprep.mubr.f32.mxu1 %v189_v1  ;;  %v190_v7 = vmax.f32 %v184_v3, 0.0 }
 0x105   :  { %296 = vmatmul.mubr.f32.vlgmr.msra.gmra.mxu1 %v188_v2 }
 0x106   :  { %v191_v6 = vmax.f32 %v186_v5, 0.0 }
 0x108   :  { %300 = vmatprep.mubr.f32.mxu1 %v191_v6 }
 0x109   :  { %301 = vmatmul.mubr.f32.gmra.mxu1 %v190_v7 }
 0x1c5   :  { %v463_v14 = vpop.f32.mrf.mxu1 }
 0x1c7   :  { %v464_v16 = vpop.f32.mrf.mxu1 }
 0x1c8   :  { %v465_v17 = vadd.f32 %v464_v16, %v463_v14 }
 0x1c9   :  { %v466_v18 = vpop.f32.mrf.mxu1 }
 0x1ca   :  { %v298_v19 = vadd.f32 %v465_v17, %v429_v15 }
 0x1cb   :  { %v467_v20 = vpop.f32.mrf.mxu1 }
 0x1cc   :  { %v306_v21 = vmax.f32 %v298_v19, 0.0  ;;  %v468_v22 = vadd.f32 %v467_v20, %v466_v18 }
 0x1ce   :  { %v303_v23 = vadd.f32 %v468_v22, %v429_v15  ;;  %519 = vmatprep.mubr.f32.mxu0 %v306_v21 }
 0x1d0   :  { %v307_v24 = vmax.f32 %v303_v23, 0.0 }
 0x1d2   :  { %520 = vmatmul.mubr.f32.vlgmr.msra.gmra.mxu0 %v307_v24 }
 0x292   :  { %v521_v26 = vpop.f32.mrf.mxu0 }
 0x293   :  { %v403_v27 = vadd.f32 %v521_v26, %v430_v25 }
 0x294   :  { %v397_v28 = vpop.f32.mrf.mxu0 }
 0x295   :  { %407 = vst [vmem:[#allocation10 + $0x8] sm:$0xff] %v403_v27  ;;  %v398_v29 = vadd.f32 %v430_v25, %v397_v28 }
 0x297   :  { %406 = vst [vmem:[#allocation10] sm:$0xff] %v398_v29 }
 0x298   :  { %623 = shalt.err (!%p620_p10)
}
 0x299   :  { %419 = dma.vmem_to_hbm [thread:$0]  %s414_s27, 256, %s735_s7, [#allocation4], %s644_s11, %s644_s11, %s645_s12  }
 0x29a   :  { %638 = dma.done.wait [#allocation4], 256  }
 0x29b   :  { %639 = vsyncadd [#allocation4], 4294967040 }
 0x29c   :  { %423 = vsyncpa [#allocation3], 1 }
 0x29d   :  { %424 = vsyncpa [#allocation6], 1 }
 0x29e   :  { %425 = vsyncpa [#allocation9], 1 }
 0x29f   :  { %426 = vsyncpa [#allocation4], 1 }

</bundles_post_ra>
